<compile_context>
chip_gen: v5e
topology: v5e:2x2
jax: 0.10.0
libtpu: 0.0.40
codegen_flags: <defaults>
</compile_context>

<pallas_src>
import functools
import math

import jax
import jax.numpy as jnp
from jax.experimental import pallas as pl
from jax.experimental.pallas import tpu as pltpu


def bcnet_kernel(x_ref, w1_ref, b1_ref, w2_ref, b2_ref, w3_ref, b3_ref, o_ref):
    # x_ref: (S, Bt); w*: (out, in); b*: (out, 1); o_ref: (A, Bt). Batch on the lane axis.
    x = x_ref[...]

    h1 = jnp.dot(w1_ref[...], x, preferred_element_type=jnp.float32) + b1_ref[...]
    h1 = jnp.tanh(h1)

    h2 = jnp.dot(w2_ref[...], h1.astype(w2_ref.dtype),
                 preferred_element_type=jnp.float32) + b2_ref[...]
    h2 = jnp.tanh(h2)

    h3 = jnp.dot(w3_ref[...], h2.astype(w3_ref.dtype),
                 preferred_element_type=jnp.float32) + b3_ref[...]
    o_ref[...] = (jnp.float32(math.pi / 2) * jnp.tanh(h3)).astype(o_ref.dtype)


def _select_batch_tile(batch, requested=None, max_tile=1024):
    """Static (trace-time) tile selection.

    <= max_tile lanes: one grid step (best for single-TC v5e/v6e — each extra step is
    ~0.35us of pure overhead). Larger: an EVEN number of <= max_tile steps so the
    "parallel" grid axis balances across v7x's two TensorCores.
    """
    if requested is not None:
        return int(requested)
    bp = pl.cdiv(batch, 128) * 128
    if bp <= max_tile:
        return bp
    steps = pl.cdiv(bp, max_tile)
    if steps % 2:
        steps += 1          # even step count -> balanced across 2 TCs on v7x
    return pl.cdiv(pl.cdiv(bp, steps), 128) * 128


def _bcnet_forward_feature_major(xT, params, batch_tile, compute_dtype):
    """xT: (S, B) feature-major. Returns (A, B). Avoids any transpose/pad HBM passes."""
    w1, b1, w2, b2, w3, b3 = params
    S, B = xT.shape
    H = w1.shape[0]
    A = w3.shape[0]

    xT = xT.astype(compute_dtype)
    w1c, w2c, w3c = (w.astype(compute_dtype) for w in (w1, w2, w3))

    grid = (pl.cdiv(B, batch_tile),)

    def batch_map(i):
        return (0, i)

    def full_map(i):
        return (0, 0)

    weight_bytes = 4 * (S * H + H * H + H * A + 2 * H + A)
    cost = pl.CostEstimate(
        flops=2 * B * (S * H + H * H + H * A),
        transcendentals=B * (2 * H + A),
        bytes_accessed=4 * B * (S + A) + weight_bytes,
    )

    return pl.pallas_call(
        bcnet_kernel,
        out_shape=jax.ShapeDtypeStruct((A, B), jnp.float32),
        grid_spec=pltpu.PrefetchScalarGridSpec(
            num_scalar_prefetch=0,
            grid=grid,
            in_specs=[
                pl.BlockSpec((S, batch_tile), batch_map),   # x^T tile (batch on lanes)
                pl.BlockSpec((H, S), full_map),             # w1 (resident across grid)
                pl.BlockSpec((H, 1), full_map),             # b1
                pl.BlockSpec((H, H), full_map),             # w2
                pl.BlockSpec((H, 1), full_map),             # b2
                pl.BlockSpec((A, H), full_map),             # w3
                pl.BlockSpec((A, 1), full_map),             # b3
            ],
            out_specs=pl.BlockSpec((A, batch_tile), batch_map),  # lane-dense store
        ),
        compiler_params=pltpu.CompilerParams(
            dimension_semantics=("parallel",),
            vmem_limit_bytes=32 * 1024 * 1024,
        ),
        cost_estimate=cost,
    )(xT, w1c, b1, w2c, b2, w3c, b3)


@functools.partial(jax.jit, static_argnames=("batch_tile", "compute_dtype"))
def bcnet_forward(x, params, *, batch_tile=None, compute_dtype=jnp.float32):
    """x: (B, S) float32. params: PyTorch-layout (w1,b1,w2,b2,w3,b3), w (out,in), b (out,1).

    Returns (B, A) float32. Identical semantics to PyTorch BCNet.forward for the default
    compute_dtype=float32 (bf16 operands are an opt-in approximation).
    """
    B = x.shape[0]
    tile = _select_batch_tile(B, batch_tile)
    outT = _bcnet_forward_feature_major(x.T, params, tile, compute_dtype)
    return outT.T  # (B, A); fuses with the kernel output inside this jit


def init_bcnet_params(key, state_dim, hidden_dim, action_dim):
    # PyTorch nn.Linear default init: U(-1/sqrt(fan_in), 1/sqrt(fan_in)).
    def linear(key, fan_in, fan_out):
        kw, kb = jax.random.split(key)
        bound = 1.0 / math.sqrt(fan_in)
        w = jax.random.uniform(kw, (fan_out, fan_in), jnp.float32, -bound, bound)
        b = jax.random.uniform(kb, (fan_out, 1), jnp.float32, -bound, bound)
        return w, b

    k1, k2, k3 = jax.random.split(key, 3)
    w1, b1 = linear(k1, state_dim, hidden_dim)
    w2, b2 = linear(k2, hidden_dim, hidden_dim)
    w3, b3 = linear(k3, hidden_dim, action_dim)
    return (w1, b1, w2, b2, w3, b3)


def bcnet_reference(x, params):
    w1, b1, w2, b2, w3, b3 = params
    h = jnp.tanh(x @ w1.T + b1.T)
    h = jnp.tanh(h @ w2.T + b2.T)
    return (math.pi / 2) * jnp.tanh(h @ w3.T + b3.T)


if __name__ == "__main__":
    state_dim, hidden_dim, action_dim = 4, 32, 2

    key = jax.random.PRNGKey(0)
    kx, kp = jax.random.split(key)
    params = init_bcnet_params(kp, state_dim, hidden_dim, action_dim)

    # Case 1: tile-aligned batch -> single grid step (v5e/v6e friendly).
    x = jax.random.normal(kx, (512, state_dim), dtype=jnp.float32)
    out = jax.block_until_ready(bcnet_forward(x, params))
    ref = bcnet_reference(x, params)
    assert out.shape == (512, action_dim)
    assert jnp.allclose(out, ref, atol=1e-5, rtol=1e-5), "mismatch vs reference (512)"

    # Case 2: tiny batch -> boundary (partial) block, no padding pass.
    out_small = jax.block_until_ready(bcnet_forward(x[:10], params))
    assert jnp.allclose(out_small, ref[:10], atol=1e-5, rtol=1e-5), "mismatch (10)"

    # Case 3: non-multiple batch large enough to get an even multi-step grid (v7x path).
    x_big = jax.random.normal(kx, (2500, state_dim), dtype=jnp.float32)
    out_big = jax.block_until_ready(bcnet_forward(x_big, params))
    ref_big = bcnet_reference(x_big, params)
    assert out_big.shape == (2500, action_dim)
    assert jnp.allclose(out_big, ref_big, atol=1e-5, rtol=1e-5), "mismatch (2500)"

    print("KERNEL_OK")
</pallas_src>

<mosaic_0001>
module attributes {stable_mosaic.version = 11 : i64} {
  func.func @bcnet_kernel(%arg0: i32, %arg1: memref<4x512xf32, #tpu.memory_space<vmem>>, %arg2: memref<32x4xf32, #tpu.memory_space<vmem>>, %arg3: memref<32x1xf32, #tpu.memory_space<vmem>>, %arg4: memref<32x32xf32, #tpu.memory_space<vmem>>, %arg5: memref<32x1xf32, #tpu.memory_space<vmem>>, %arg6: memref<2x32xf32, #tpu.memory_space<vmem>>, %arg7: memref<2x1xf32, #tpu.memory_space<vmem>>, %arg8: memref<2x512xf32, #tpu.memory_space<vmem>>) attributes {dimension_semantics = [#tpu.dimension_semantics<parallel>], iteration_bounds = array<i64: 1>, scalar_prefetch = 0 : i64, scratch_operands = 0 : i64, tpu.core_type = #tpu.core_type<tc>, window_params = [{transform_indices = @transform_0, window_bounds = array<i64: 4, 512>}, {pipeline_mode = #tpu.pipeline_mode<synchronous>, transform_indices = @transform_1, window_bounds = array<i64: 32, 4>}, {pipeline_mode = #tpu.pipeline_mode<synchronous>, transform_indices = @transform_2, window_bounds = array<i64: 32, 1>}, {pipeline_mode = #tpu.pipeline_mode<synchronous>, transform_indices = @transform_3, window_bounds = array<i64: 32, 32>}, {pipeline_mode = #tpu.pipeline_mode<synchronous>, transform_indices = @transform_4, window_bounds = array<i64: 32, 1>}, {pipeline_mode = #tpu.pipeline_mode<synchronous>, transform_indices = @transform_5, window_bounds = array<i64: 2, 32>}, {pipeline_mode = #tpu.pipeline_mode<synchronous>, transform_indices = @transform_6, window_bounds = array<i64: 2, 1>}, {transform_indices = @transform_7, window_bounds = array<i64: 2, 512>}]} {
    %c0 = arith.constant 0 : index
    %c0_0 = arith.constant 0 : index
    %0 = vector.load %arg1[%c0, %c0_0] : memref<4x512xf32, #tpu.memory_space<vmem>>, vector<4x512xf32>
    %c0_1 = arith.constant 0 : index
    %c0_2 = arith.constant 0 : index
    %1 = vector.load %arg2[%c0_1, %c0_2] : memref<32x4xf32, #tpu.memory_space<vmem>>, vector<32x4xf32>
    %cst = arith.constant dense<0.000000e+00> : vector<32x512xf32>
    %2 = tpu.matmul %1, %0, %cst {dimension_numbers = #tpu.dot_dimension_numbers<[1], [0], [0], [1], [0, 0, 1, 1], [], []>} : vector<32x4xf32>, vector<4x512xf32>, vector<32x512xf32> -> vector<32x512xf32>
    %c0_3 = arith.constant 0 : index
    %c0_4 = arith.constant 0 : index
    %3 = vector.load %arg3[%c0_3, %c0_4] : memref<32x1xf32, #tpu.memory_space<vmem>>, vector<32x1xf32>
    %4 = vector.broadcast %3 : vector<32x1xf32> to vector<32x512xf32>
    %5 = arith.addf %2, %4 : vector<32x512xf32>
    %6 = math.tanh %5 : vector<32x512xf32>
    %c0_5 = arith.constant 0 : index
    %c0_6 = arith.constant 0 : index
    %7 = vector.load %arg4[%c0_5, %c0_6] : memref<32x32xf32, #tpu.memory_space<vmem>>, vector<32x32xf32>
    %cst_7 = arith.constant dense<0.000000e+00> : vector<32x512xf32>
    %8 = tpu.matmul %7, %6, %cst_7 {dimension_numbers = #tpu.dot_dimension_numbers<[1], [0], [0], [1], [0, 0, 1, 1], [], []>} : vector<32x32xf32>, vector<32x512xf32>, vector<32x512xf32> -> vector<32x512xf32>
    %c0_8 = arith.constant 0 : index
    %c0_9 = arith.constant 0 : index
    %9 = vector.load %arg5[%c0_8, %c0_9] : memref<32x1xf32, #tpu.memory_space<vmem>>, vector<32x1xf32>
    %10 = vector.broadcast %9 : vector<32x1xf32> to vector<32x512xf32>
    %11 = arith.addf %8, %10 : vector<32x512xf32>
    %12 = math.tanh %11 : vector<32x512xf32>
    %c0_10 = arith.constant 0 : index
    %c0_11 = arith.constant 0 : index
    %13 = vector.load %arg6[%c0_10, %c0_11] : memref<2x32xf32, #tpu.memory_space<vmem>>, vector<2x32xf32>
    %cst_12 = arith.constant dense<0.000000e+00> : vector<2x512xf32>
    %14 = tpu.matmul %13, %12, %cst_12 {dimension_numbers = #tpu.dot_dimension_numbers<[1], [0], [0], [1], [0, 0, 1, 1], [], []>} : vector<2x32xf32>, vector<32x512xf32>, vector<2x512xf32> -> vector<2x512xf32>
    %c0_13 = arith.constant 0 : index
    %c0_14 = arith.constant 0 : index
    %15 = vector.load %arg7[%c0_13, %c0_14] : memref<2x1xf32, #tpu.memory_space<vmem>>, vector<2x1xf32>
    %16 = vector.broadcast %15 : vector<2x1xf32> to vector<2x512xf32>
    %17 = arith.addf %14, %16 : vector<2x512xf32>
    %18 = math.tanh %17 : vector<2x512xf32>
    %cst_15 = arith.constant 1.57079637 : f32
    %19 = vector.broadcast %cst_15 : f32 to vector<2x512xf32>
    %20 = arith.mulf %19, %18 : vector<2x512xf32>
    %c0_16 = arith.constant 0 : index
    %c0_17 = arith.constant 0 : index
    %21 = vector.load %arg8[%c0_16, %c0_17] : memref<2x512xf32, #tpu.memory_space<vmem>>, vector<2x512xf32>
    tpu.vector_store %arg8[%c0_16, %c0_17], %20 {strides = array<i32>} : memref<2x512xf32, #tpu.memory_space<vmem>>, vector<2x512xf32>,
    return
  }
  func.func @transform_0(%arg0: i32) -> (i32, i32) {
    %c0_i32 = arith.constant 0 : i32
    %c0_i32_0 = arith.constant 0 : i32
    return %c0_i32, %arg0 : i32, i32
  }
  func.func @transform_1(%arg0: i32) -> (i32, i32) {
    %c0_i32 = arith.constant 0 : i32
    %c0_i32_0 = arith.constant 0 : i32
    %c0_i32_1 = arith.constant 0 : i32
    return %c0_i32, %c0_i32_0 : i32, i32
  }
  func.func @transform_2(%arg0: i32) -> (i32, i32) {
    %c0_i32 = arith.constant 0 : i32
    %c0_i32_0 = arith.constant 0 : i32
    %c0_i32_1 = arith.constant 0 : i32
    return %c0_i32, %c0_i32_0 : i32, i32
  }
  func.func @transform_3(%arg0: i32) -> (i32, i32) {
    %c0_i32 = arith.constant 0 : i32
    %c0_i32_0 = arith.constant 0 : i32
    %c0_i32_1 = arith.constant 0 : i32
    return %c0_i32, %c0_i32_0 : i32, i32
  }
  func.func @transform_4(%arg0: i32) -> (i32, i32) {
    %c0_i32 = arith.constant 0 : i32
    %c0_i32_0 = arith.constant 0 : i32
    %c0_i32_1 = arith.constant 0 : i32
    return %c0_i32, %c0_i32_0 : i32, i32
  }
  func.func @transform_5(%arg0: i32) -> (i32, i32) {
    %c0_i32 = arith.constant 0 : i32
    %c0_i32_0 = arith.constant 0 : i32
    %c0_i32_1 = arith.constant 0 : i32
    return %c0_i32, %c0_i32_0 : i32, i32
  }
  func.func @transform_6(%arg0: i32) -> (i32, i32) {
    %c0_i32 = arith.constant 0 : i32
    %c0_i32_0 = arith.constant 0 : i32
    %c0_i32_1 = arith.constant 0 : i32
    return %c0_i32, %c0_i32_0 : i32, i32
  }
  func.func @transform_7(%arg0: i32) -> (i32, i32) {
    %c0_i32 = arith.constant 0 : i32
    %c0_i32_0 = arith.constant 0 : i32
    return %c0_i32, %arg0 : i32, i32
  }
}

</mosaic_0001>

<bundles_post_ra>
// kernel: bcnet_forward.1
= control target key start
LH: loop header
LB: loop body
LE: loop exit
PB: predicated region body
PF: predicated region fallthrough
CT: control target
= control target key end

     0   :  { %v664_v2 = vmov 0   ;;  %s810_s0 = inlined_call_operand.vmem [shape: f32[4,512], index: 0, kind: input, shape index: {}]   ;;  %s811_s1 = inlined_call_operand.vmem [shape: f32[32,4], index: 1, kind: input, shape index: {}]   ;;  %s812_s2 = inlined_call_operand.vmem [shape: f32[32,1], index: 2, kind: input, shape index: {}]   ;;  %s813_s3 = inlined_call_operand.vmem [shape: f32[32,32], index: 3, kind: input, shape index: {}]   ;;  %s814_s4 = inlined_call_operand.vmem [shape: f32[32,1], index: 4, kind: input, shape index: {}]   ;;  %s815_s5 = inlined_call_operand.vmem [shape: f32[2,32], index: 5, kind: input, shape index: {}]   ;;  %s816_s6 = inlined_call_operand.vmem [shape: f32[2,1], index: 6, kind: input, shape index: {}]   ;;  %s817_s7 = inlined_call_operand.hbm [shape: f32[2,512], index: 7, kind: output, shape index: {}]  }
   0x1   :  { %v27_v0 = vld [vmem:[%s810_s0] sm:$0xff]  ;;  %v28_v1 = vld [vmem:[%s810_s0 + $0x8] sm:$0xff]  ;;  %564 = vset.pattern.permute.xlu1 %v664_v2  ;;  %563 = vset.pattern.permute.xlu0 %v664_v2  ;;  %v36_v4 = vld [vmem:[%s812_s2 + $0x18] sm:$0xff] }
   0x2   :  { %59 = vst [vmem:[#allocation1] ss:$2 sm:$0xff] %v27_v0  ;;  %v34_v3 = vld [vmem:[%s812_s2 + $0x8] sm:$0xff]  ;;  %565 = vset.pattern.permute.xlu2 %v664_v2  ;;  %54 = vperm.xlu0 %563, %v36_v4  }
   0x3   :  { %61 = vst [vmem:[#allocation1 + $0x10] ss:$2 sm:$0xff] %v28_v1  ;;  %44 = vperm.xlu1 %564, %v34_v3  }
   0x4   :  { %12 = vsyncpa [#allocation3], 0  ;;  %vm79_vm0 = vcmask 1043456   ;;  %v29_v5 = vld [vmem:[%s811_s1] sm:$0xff]  ;;  %vm66_vm1 = vcmask 31744   ;;  %v35_v11 = vld [vmem:[%s812_s2 + $0x10] sm:$0xff] }
   0x5   :  { %v33_v10 = vld [vmem:[%s812_s2] sm:$0xff]  ;;  %v30_v12 = vld [vmem:[%s811_s1 + $0x8] sm:$0xff]  ;;  %v31_v15 = vld [vmem:[%s811_s1 + $0x10] sm:$0xff]  ;;  %vm248_vm2 = vcmask 261120   ;;  %vm498_vm3 = vcmask 1041408   ;;  %vm500_vm4 = vcmask 1045508  }
   0x6   :  { %v225_v13 = vld [vmem:[%s814_s4 + $0x8] sm:$0xff]  ;;  %v224_v14 = vld [vmem:[%s814_s4] sm:$0xff]  ;;  %v32_v16 = vld [vmem:[%s811_s1 + $0x18] sm:$0xff]  ;;  %s512_s14 = sshll.u32 %s817_s7, 4  ;;  %s513_s14 = int_to_ptr.hbm [resolvable:$true] %s512_s14 }
   0x7   :  { %v220_v62 = vld [vmem:[%s813_s3] sm:$0xff]  ;;  %v227_v1 = vld [vmem:[%s814_s4 + $0x18] sm:$0xff] }
   0x8   :  { %245 = vperm.xlu2 %565, %v227_v1  }
   0x9   :  { %v62_v6 = vld.sshfl [vmem:[#allocation1] sm:$0xff pattern:$0x75316420]  ;;  %v63_v7 = vld.sshfl [vmem:[#allocation1 + $0x8] sm:$0xff pattern:$0x75316420] }
   0xa   :  { %521 = vmatpush.msk.msra.mxu0 %vm79_vm0, %v62_v6  ;;  %526 = vmatpush.msk.msra.mxu1 %vm79_vm0, %v63_v7  ;;  %v64_v8 = vld.sshfl [vmem:[#allocation1 + $0x10] sm:$0xff pattern:$0x75316420]  ;;  %v65_v9 = vld.sshfl [vmem:[#allocation1 + $0x18] sm:$0xff pattern:$0x75316420] }
   0xb   :  { %531 = vmatpush.msk.msra.mxu2 %vm79_vm0, %v64_v8  ;;  %536 = vmatpush.msk.msra.mxu3 %vm79_vm0, %v65_v9  ;;  %v221_v7 = vld [vmem:[%s813_s3 + $0x8] sm:$0xff]  ;;  %v226_v8 = vld [vmem:[%s814_s4 + $0x10] sm:$0xff] }
   0xc   :  { %522 = vmatmul.msk.f32.vlgmr.msra.gmra.mxu0 %vm66_vm1, %v29_v5  ;;  %527 = vmatmul.msk.f32.vlgmr.msra.gmra.mxu1 %vm66_vm1, %v29_v5  ;;  %v222_v9 = vld [vmem:[%s813_s3 + $0x10] sm:$0xff] }
   0xd   :  { %532 = vmatmul.msk.f32.vlgmr.msra.gmra.mxu2 %vm66_vm1, %v29_v5  ;;  %537 = vmatmul.msk.f32.vlgmr.msra.gmra.mxu3 %vm66_vm1, %v29_v5 }
   0xe   :  { %39 = vperm.xlu1 %564, %v33_v10   ;;  %49 = vperm.xlu0 %563, %v35_v11   ;;  %v394_v10 = vld [vmem:[%s816_s6] sm:$0x3]  ;;  %v223_v11 = vld [vmem:[%s813_s3 + $0x18] sm:$0xff] }
  0x10   :  { %240 = vperm.xlu2 %565, %v226_v8  }
  0x14   :  { %523 = vmatmul.msk.f32.gmra.mxu0 %vm66_vm1, %v30_v12  ;;  %528 = vmatmul.msk.f32.gmra.mxu1 %vm66_vm1, %v30_v12 }
  0x15   :  { %533 = vmatmul.msk.f32.gmra.mxu2 %vm66_vm1, %v30_v12  ;;  %538 = vmatmul.msk.f32.gmra.mxu3 %vm66_vm1, %v30_v12 }
  0x16   :  { %235 = vperm.xlu0 %563, %v225_v13   ;;  %230 = vperm.xlu1 %564, %v224_v14  }
  0x18   :  { %397 = vperm.xlu2 %565, %v394_v10  }
  0x1c   :  { %524 = vmatmul.msk.f32.gmra.mxu0 %vm66_vm1, %v31_v15  ;;  %529 = vmatmul.msk.f32.gmra.mxu1 %vm66_vm1, %v31_v15 }
  0x1d   :  { %534 = vmatmul.msk.f32.gmra.mxu2 %vm66_vm1, %v31_v15  ;;  %539 = vmatmul.msk.f32.gmra.mxu3 %vm66_vm1, %v31_v15 }
  0x24   :  { %525 = vmatmul.msk.f32.gmra.mxu0 %vm66_vm1, %v32_v16  ;;  %530 = vmatmul.msk.f32.gmra.mxu1 %vm66_vm1, %v32_v16 }
  0x25   :  { %535 = vmatmul.msk.f32.gmra.mxu2 %vm66_vm1, %v32_v16  ;;  %540 = vmatmul.msk.f32.gmra.mxu3 %vm66_vm1, %v32_v16 }
  0x62   :  { %v246_v16 = vpop.permute.xlu2 %245 }
  0x74   :  { %v55_v24 = vpop.permute.xlu0 %54 }
  0x75   :  { %v45_v23 = vpop.permute.xlu1 %44 }
  0x80   :  { %v40_v29 = vpop.permute.xlu1 %39  ;;  %v50_v36 = vpop.permute.xlu0 %49 }
  0x89   :  { %v105_v17 = vpop.f32.mrf.mxu0  ;;  %v134_v18 = vpop.f32.mrf.mxu1 }
  0x8a   :  { %v106_v30 = vadd.f32 %v105_v17, %v40_v29  ;;  %v135_v41 = vadd.f32 %v134_v18, %v40_v29 }
  0x8c   :  { %566 = vtanh.f32 %v106_v30  ;;  %v236_v30 = vpop.permute.xlu0 %235 }
  0x90   :  { %v163_v19 = vpop.f32.mrf.mxu2  ;;  %v192_v20 = vpop.f32.mrf.mxu3 }
  0x91   :  { %v108_v21 = vpop.f32.mrf.mxu0  ;;  %v137_v22 = vpop.f32.mrf.mxu1  ;;  %v164_v56 = vadd.f32 %v163_v19, %v40_v29  ;;  %v193_v58 = vadd.f32 %v192_v20, %v40_v29 }
  0x92   :  { %v109_v31 = vadd.f32 %v108_v21, %v45_v23  ;;  %v138_v42 = vadd.f32 %v137_v22, %v45_v23  ;;  %v567_v45 = vpop.eup %566  ;;  %v241_v21 = vpop.permute.xlu2 %240 }
  0x94   :  { %568 = vtanh.f32 %v109_v31  ;;  %v231_v31 = vpop.permute.xlu1 %230 }
  0x98   :  { %v166_v25 = vpop.f32.mrf.mxu2  ;;  %v195_v26 = vpop.f32.mrf.mxu3 }
  0x99   :  { %v111_v27 = vpop.f32.mrf.mxu0  ;;  %v140_v28 = vpop.f32.mrf.mxu1  ;;  %v167_v52 = vadd.f32 %v166_v25, %v45_v23  ;;  %v196_v54 = vadd.f32 %v195_v26, %v45_v23 }
  0x9a   :  { %v112_v39 = vadd.f32 %v111_v27, %v50_v36  ;;  %v141_v40 = vadd.f32 %v140_v28, %v50_v36  ;;  %v569_v49 = vpop.eup %568 }
  0xa0   :  { %v169_v32 = vpop.f32.mrf.mxu2  ;;  %v198_v33 = vpop.f32.mrf.mxu3 }
  0xa1   :  { %v114_v34 = vpop.f32.mrf.mxu0  ;;  %v143_v35 = vpop.f32.mrf.mxu1  ;;  %v170_v46 = vadd.f32 %v169_v32, %v50_v36  ;;  %v199_v50 = vadd.f32 %v198_v33, %v50_v36 }
  0xa2   :  { %v115_v37 = vadd.f32 %v114_v34, %v55_v24  ;;  %v144_v38 = vadd.f32 %v143_v35, %v55_v24 }
  0xa4   :  { %570 = vtanh.f32 %v115_v37 }
  0xa5   :  { %572 = vtanh.f32 %v144_v38 }
  0xa6   :  { %574 = vtanh.f32 %v112_v39 }
  0xa7   :  { %576 = vtanh.f32 %v141_v40 }
  0xa8   :  { %v172_v43 = vpop.f32.mrf.mxu2  ;;  %v201_v44 = vpop.f32.mrf.mxu3  ;;  %578 = vtanh.f32 %v135_v41 }
  0xa9   :  { %v173_v47 = vadd.f32 %v172_v43, %v55_v24  ;;  %v202_v48 = vadd.f32 %v201_v44, %v55_v24  ;;  %580 = vtanh.f32 %v138_v42 }
  0xaa   :  { %v571_v51 = vpop.eup %570 }
  0xab   :  { %582 = vtanh.f32 %v173_v47  ;;  %v573_v53 = vpop.eup %572  ;;  %273 = vmatpush.msrb.mxu0 %v571_v51 }
  0xac   :  { %584 = vtanh.f32 %v202_v48  ;;  %v575_v55 = vpop.eup %574  ;;  %302 = vmatpush.msrb.mxu1 %v573_v53 }
  0xad   :  { %586 = vtanh.f32 %v170_v46  ;;  %v577_v57 = vpop.eup %576  ;;  %274 = vmatpush.msrb.mxu0 %v575_v55 }
  0xae   :  { %588 = vtanh.f32 %v199_v50  ;;  %v579_v59 = vpop.eup %578  ;;  %303 = vmatpush.msrb.mxu1 %v577_v57  ;;  %v393_v50 = vld [vmem:[%s815_s5] sm:$0x3]  ;;  %s665_s5 = smov [#allocation2]  }
  0xaf   :  { %590 = vtanh.f32 %v167_v52  ;;  %v581_v60 = vpop.eup %580  ;;  %275 = vmatpush.msrb.mxu0 %v569_v49  ;;  %s510_s11 = sshll.u32 %s665_s5, 4  ;;  %s511_s11 = int_to_ptr.vmem [resolvable:$true] %s510_s11 }
  0xb0   :  { %592 = vtanh.f32 %v196_v54  ;;  %304 = vmatpush.msrb.mxu1 %v581_v60 }
  0xb1   :  { %v583_v61 = vpop.eup %582  ;;  %594 = vtanh.f32 %v164_v56  ;;  %276 = vmatpush.msrb.mxu0 %v567_v45 }
  0xb2   :  { %v585_v63 = vpop.eup %584  ;;  %596 = vtanh.f32 %v193_v58  ;;  %331 = vmatpush.msrb.mxu2 %v583_v61  ;;  %305 = vmatpush.msrb.mxu1 %v579_v59 }
  0xb3   :  { %v587_v0 = vpop.eup %586  ;;  %360 = vmatpush.msrb.mxu3 %v585_v63  ;;  %541 = vmatmul.msk.f32.vlgmr.msrb.gmra.mxu0 %vm248_vm2, %v220_v62 }
  0xb4   :  { %v589_v2 = vpop.eup %588  ;;  %545 = vmatmul.msk.f32.vlgmr.msrb.gmra.mxu1 %vm248_vm2, %v220_v62  ;;  %332 = vmatpush.msrb.mxu2 %v587_v0 }
  0xb5   :  { %v591_v3 = vpop.eup %590  ;;  %361 = vmatpush.msrb.mxu3 %v589_v2  ;;  %v398_v2 = vpop.permute.xlu2 %397 }
  0xb6   :  { %v593_v4 = vpop.eup %592  ;;  %333 = vmatpush.msrb.mxu2 %v591_v3 }
  0xb7   :  { %v595_v5 = vpop.eup %594  ;;  %362 = vmatpush.msrb.mxu3 %v593_v4 }
  0xb8   :  { %v597_v6 = vpop.eup %596  ;;  %334 = vmatpush.msrb.mxu2 %v595_v5 }
  0xb9   :  { %363 = vmatpush.msrb.mxu3 %v597_v6  ;;  %549 = vmatmul.msk.f32.vlgmr.msrb.gmra.mxu2 %vm248_vm2, %v220_v62 }
  0xba   :  { %553 = vmatmul.msk.f32.vlgmr.msrb.gmra.mxu3 %vm248_vm2, %v220_v62 }
  0xbb   :  { %542 = vmatmul.msk.f32.gmra.mxu0 %vm248_vm2, %v221_v7 }
  0xbc   :  { %546 = vmatmul.msk.f32.gmra.mxu1 %vm248_vm2, %v221_v7 }
  0xc1   :  { %550 = vmatmul.msk.f32.gmra.mxu2 %vm248_vm2, %v221_v7 }
  0xc2   :  { %554 = vmatmul.msk.f32.gmra.mxu3 %vm248_vm2, %v221_v7 }
  0xc3   :  { %543 = vmatmul.msk.f32.gmra.mxu0 %vm248_vm2, %v222_v9 }
  0xc4   :  { %547 = vmatmul.msk.f32.gmra.mxu1 %vm248_vm2, %v222_v9 }
  0xc9   :  { %551 = vmatmul.msk.f32.gmra.mxu2 %vm248_vm2, %v222_v9 }
  0xca   :  { %555 = vmatmul.msk.f32.gmra.mxu3 %vm248_vm2, %v222_v9 }
  0xcb   :  { %544 = vmatmul.msk.f32.gmra.mxu0 %vm248_vm2, %v223_v11 }
  0xcc   :  { %548 = vmatmul.msk.f32.gmra.mxu1 %vm248_vm2, %v223_v11 }
  0xd1   :  { %552 = vmatmul.msk.f32.gmra.mxu2 %vm248_vm2, %v223_v11 }
  0xd2   :  { %556 = vmatmul.msk.f32.gmra.mxu3 %vm248_vm2, %v223_v11 }
 0x130   :  { %v278_v12 = vpop.f32.mrf.mxu0 }
 0x131   :  { %v307_v13 = vpop.f32.mrf.mxu1  ;;  %v279_v36 = vadd.f32 %v278_v12, %v231_v31 }
 0x132   :  { %v308_v37 = vadd.f32 %v307_v13, %v231_v31 }
 0x138   :  { %v281_v14 = vpop.f32.mrf.mxu0 }
 0x139   :  { %v310_v15 = vpop.f32.mrf.mxu1  ;;  %v282_v32 = vadd.f32 %v281_v14, %v236_v30 }
 0x13a   :  { %v311_v33 = vadd.f32 %v310_v15, %v236_v30 }
 0x13c   :  { %v336_v17 = vpop.f32.mrf.mxu2 }
 0x13d   :  { %v365_v18 = vpop.f32.mrf.mxu3  ;;  %v337_v55 = vadd.f32 %v336_v17, %v231_v31 }
 0x13e   :  { %v366_v56 = vadd.f32 %v365_v18, %v231_v31 }
 0x140   :  { %v284_v19 = vpop.f32.mrf.mxu0 }
 0x141   :  { %v313_v20 = vpop.f32.mrf.mxu1  ;;  %v285_v24 = vadd.f32 %v284_v19, %v241_v21 }
 0x142   :  { %v314_v25 = vadd.f32 %v313_v20, %v241_v21 }
 0x143   :  { %598 = vtanh.f32 %v285_v24 }
 0x144   :  { %v339_v22 = vpop.f32.mrf.mxu2  ;;  %600 = vtanh.f32 %v314_v25 }
 0x145   :  { %v368_v23 = vpop.f32.mrf.mxu3  ;;  %v340_v52 = vadd.f32 %v339_v22, %v236_v30 }
 0x146   :  { %v369_v54 = vadd.f32 %v368_v23, %v236_v30 }
 0x148   :  { %v287_v26 = vpop.f32.mrf.mxu0 }
 0x149   :  { %v316_v27 = vpop.f32.mrf.mxu1  ;;  %v288_v28 = vadd.f32 %v287_v26, %v246_v16  ;;  %v599_v38 = vpop.eup %598 }
 0x14a   :  { %v317_v29 = vadd.f32 %v316_v27, %v246_v16  ;;  %v601_v39 = vpop.eup %600 }
 0x14b   :  { %602 = vtanh.f32 %v288_v28 }
 0x14c   :  { %604 = vtanh.f32 %v317_v29  ;;  %v342_v34 = vpop.f32.mrf.mxu2 }
 0x14d   :  { %v371_v35 = vpop.f32.mrf.mxu3  ;;  %606 = vtanh.f32 %v282_v32  ;;  %v343_v45 = vadd.f32 %v342_v34, %v241_v21 }
 0x14e   :  { %608 = vtanh.f32 %v311_v33  ;;  %v372_v49 = vadd.f32 %v371_v35, %v241_v21 }
 0x14f   :  { %610 = vtanh.f32 %v279_v36 }
 0x150   :  { %612 = vtanh.f32 %v308_v37 }
 0x151   :  { %v603_v40 = vpop.eup %602 }
 0x152   :  { %v605_v41 = vpop.eup %604  ;;  %415 = vmatpush.msra.mxu0 %v603_v40 }
 0x153   :  { %435 = vmatpush.msra.mxu1 %v605_v41  ;;  %v607_v44 = vpop.eup %606 }
 0x154   :  { %v345_v42 = vpop.f32.mrf.mxu2  ;;  %416 = vmatpush.msra.mxu0 %v599_v38  ;;  %v609_v48 = vpop.eup %608 }
 0x155   :  { %v374_v43 = vpop.f32.mrf.mxu3  ;;  %v346_v46 = vadd.f32 %v345_v42, %v246_v16  ;;  %436 = vmatpush.msra.mxu1 %v601_v39  ;;  %v611_v51 = vpop.eup %610 }
 0x156   :  { %v375_v47 = vadd.f32 %v374_v43, %v246_v16  ;;  %417 = vmatpush.msra.mxu0 %v607_v44  ;;  %v613_v53 = vpop.eup %612 }
 0x157   :  { %614 = vtanh.f32 %v346_v46  ;;  %437 = vmatpush.msra.mxu1 %v609_v48 }
 0x158   :  { %616 = vtanh.f32 %v375_v47  ;;  %418 = vmatpush.msra.mxu0 %v611_v51 }
 0x159   :  { %618 = vtanh.f32 %v343_v45  ;;  %438 = vmatpush.msra.mxu1 %v613_v53  ;;  %557 = vmatmul.msk.f32.vlgmr.msra.gmra.mxu0 %vm248_vm2, %v393_v50 }
 0x15a   :  { %620 = vtanh.f32 %v372_v49  ;;  %558 = vmatmul.msk.f32.vlgmr.msra.gmra.mxu1 %vm248_vm2, %v393_v50 }
 0x15b   :  { %622 = vtanh.f32 %v340_v52 }
 0x15c   :  { %624 = vtanh.f32 %v369_v54 }
 0x15d   :  { %v615_v57 = vpop.eup %614  ;;  %626 = vtanh.f32 %v337_v55 }
 0x15e   :  { %v617_v58 = vpop.eup %616  ;;  %628 = vtanh.f32 %v366_v56  ;;  %455 = vmatpush.msra.mxu2 %v615_v57 }
 0x15f   :  { %v619_v59 = vpop.eup %618  ;;  %475 = vmatpush.msra.mxu3 %v617_v58 }
 0x160   :  { %v621_v60 = vpop.eup %620  ;;  %456 = vmatpush.msra.mxu2 %v619_v59 }
 0x161   :  { %v623_v61 = vpop.eup %622  ;;  %476 = vmatpush.msra.mxu3 %v621_v60 }
 0x162   :  { %v625_v62 = vpop.eup %624  ;;  %457 = vmatpush.msra.mxu2 %v623_v61 }
 0x163   :  { %v627_v63 = vpop.eup %626  ;;  %477 = vmatpush.msra.mxu3 %v625_v62 }
 0x164   :  { %v629_v0 = vpop.eup %628  ;;  %458 = vmatpush.msra.mxu2 %v627_v63 }
 0x165   :  { %478 = vmatpush.msra.mxu3 %v629_v0  ;;  %559 = vmatmul.msk.f32.vlgmr.msra.gmra.mxu2 %vm248_vm2, %v393_v50 }
 0x166   :  { %560 = vmatmul.msk.f32.vlgmr.msra.gmra.mxu3 %vm248_vm2, %v393_v50 }
 0x1d6   :  { %v420_v4 = vpop.f32.mrf.mxu0 }
 0x1d7   :  { %v440_v1 = vpop.f32.mrf.mxu1  ;;  %v421_v5 = vadd.f32 %v420_v4, %v398_v2 }
 0x1d8   :  { %v441_v3 = vadd.f32 %v440_v1, %v398_v2 }
 0x1da   :  { %630 = vtanh.f32 %v441_v3 }
 0x1db   :  { %632 = vtanh.f32 %v421_v5 }
 0x1e0   :  { %v631_v10 = vpop.eup %630 }
 0x1e1   :  { %v488_v11 = vmul.f32 1.5707964, %v631_v10  ;;  %v633_v12 = vpop.eup %632 }
 0x1e2   :  { %v487_v19 = vmul.f32 1.5707964, %v633_v12 }
 0x1e3   :  { %v495_v16 = vrot.slane %v488_v11, 6 }
 0x1e5   :  { %v499_v21 = vsel %vm498_vm3, %v487_v19, %v495_v16 }
 0x1e8   :  { %v460_v6 = vpop.f32.mrf.mxu2 }
 0x1e9   :  { %v461_v7 = vadd.f32 %v460_v6, %v398_v2  ;;  %v480_v8 = vpop.f32.mrf.mxu3 }
 0x1ea   :  { %v481_v9 = vadd.f32 %v480_v8, %v398_v2 }
 0x1eb   :  { %634 = vtanh.f32 %v461_v7 }
 0x1ec   :  { %636 = vtanh.f32 %v481_v9 }
 0x1f1   :  { %v635_v13 = vpop.eup %634 }
 0x1f2   :  { %v637_v14 = vpop.eup %636  ;;  %v489_v15 = vmul.f32 1.5707964, %v635_v13 }
 0x1f3   :  { %v490_v17 = vmul.f32 1.5707964, %v637_v14 }
 0x1f4   :  { %v496_v18 = vrot.slane %v489_v15, 4 }
 0x1f5   :  { %v497_v20 = vrot.slane %v490_v17, 2 }
 0x1f7   :  { %v501_v22 = vsel %vm500_vm4, %v496_v18, %v497_v20 }
 0x1f8   :  { %v502_v23 = vsel %vm79_vm0, %v499_v21, %v501_v22 }
 0x1f9   :  { %504 = vst [vmem:[#allocation2] sm:$0xff] %v502_v23 }
 0x1fa   :  { %515 = dma.vmem_to_hbm [thread:$0]  %s511_s11, 128, %s513_s14, [#allocation3]  }
 0x1fb   :  { %662 = dma.done.wait [#allocation3], 128  }
 0x1fc   :  { %663 = vsyncadd [#allocation3], 4294967168 }
 0x1fd   :  { %520 = vsyncpa [#allocation3], 1 }

</bundles_post_ra>
